<compile_context>
chip_gen: v6e
topology: v6e:2x2x1
jax: 0.10.0
libtpu: 0.0.40
codegen_flags: <defaults>
</compile_context>

<pallas_src>
import functools

import jax
import jax.numpy as jnp
from jax import lax
from jax.experimental import pallas as pl
from jax.experimental.pallas import tpu as pltpu

_LANES = 128
_CHUNK = 32          # in-kernel row chunk; matches int8 (32,128) sublane tiling


def _round_up(x, m):
    return ((x + m - 1) // m) * m


# ---------------------------------------------------------------------------
# Pallas kernel: per-edge vector + length
# ---------------------------------------------------------------------------
def _edge_kernel(cell_ref, lo_ref, hi_ref, ps_ref, pd_ref, sh_ref, g_ref, out_ref):
    """cell_ref : (B*9,)  f32  SMEM, cell[b,i,j] at b*9 + i*3 + j
       lo_ref   : (C,)    i32  SMEM, min graph id of each 32x128-edge chunk (global)
       hi_ref   : (C,)    i32  SMEM, max graph id of each chunk
       ps_ref/pd_ref : (3, Rt, 128) f32    pos_src / pos_dst
       sh_ref   : (3, Rt, 128) int8        cell_shift
       g_ref    : (1, Rt, 128) int32       graph id of the source atom
       out_ref  : (4, Rt, 128) f32         rows 0..2 = edge_vec, row 3 = length
    """
    rows = ps_ref.shape[1]                       # static
    n_chunks = rows // _CHUNK                    # static
    tile = pl.program_id(0)

    def chunk_body(c, carry):
        r = pl.multiple_of(c * _CHUNK, _CHUNK)
        sl = pl.ds(r, _CHUNK)

        # Accumulate the shift . cell[graph] contribution first (keeps ps/pd out of
        # the live range of the graph loop -> low vreg pressure, no spills).
        s0 = sh_ref[0, sl, :].astype(jnp.float32)
        s1 = sh_ref[1, sl, :].astype(jnp.float32)
        s2 = sh_ref[2, sl, :].astype(jnp.float32)
        g = g_ref[0, sl, :]

        a0 = jnp.zeros_like(s0)
        a1 = jnp.zeros_like(s0)
        a2 = jnp.zeros_like(s0)

        idx = tile * n_chunks + c                # global chunk index
        g_lo = lo_ref[idx]
        g_hi = hi_ref[idx]

        def graph_body(b, acc):
            a0, a1, a2 = acc
            m = (g == b).astype(jnp.float32)
            m0 = m * s0
            m1 = m * s1
            m2 = m * s2
            base = b * 9                         # dynamic scalar reads from SMEM
            a0 = a0 + m0 * cell_ref[base + 0] + m1 * cell_ref[base + 3] + m2 * cell_ref[base + 6]
            a1 = a1 + m0 * cell_ref[base + 1] + m1 * cell_ref[base + 4] + m2 * cell_ref[base + 7]
            a2 = a2 + m0 * cell_ref[base + 2] + m1 * cell_ref[base + 5] + m2 * cell_ref[base + 8]
            return a0, a1, a2

        # Only the graphs actually present in this chunk (typically 1) are visited,
        # so VALU work is O(1) per edge regardless of num_batch.
        a0, a1, a2 = lax.fori_loop(g_lo, g_hi + 1, graph_body, (a0, a1, a2))

        v0 = pd_ref[0, sl, :] - ps_ref[0, sl, :] + a0
        v1 = pd_ref[1, sl, :] - ps_ref[1, sl, :] + a1
        v2 = pd_ref[2, sl, :] - ps_ref[2, sl, :] + a2

        out_ref[0, sl, :] = v0
        out_ref[1, sl, :] = v1
        out_ref[2, sl, :] = v2
        out_ref[3, sl, :] = jnp.sqrt(v0 * v0 + v1 * v1 + v2 * v2)
        return carry

    lax.fori_loop(0, n_chunks, chunk_body, 0)


# ---------------------------------------------------------------------------
# Jitted forward: lane-major gathers + pallas_call
# ---------------------------------------------------------------------------
@functools.partial(jax.jit, static_argnames=("max_rows_per_tile", "transpose_out"))
def _edge_forward(cell, cell_shift, pos, batch, idx_src, idx_dst,
                  *, max_rows_per_tile=512, transpose_out=True):
    e = idx_src.shape[0]                                   # static inside jit
    rows_min = max(1, -(-e // _LANES))                     # ceil(e / 128)

    # Big tiles amortize the ~0.35us/step overhead; ~3 MB/step double-buffered (~6 MB)
    # fits every generation's default scoped VMEM (incl. v5e's 16 MiB).
    rows_per_tile = min(max_rows_per_tile, _round_up(rows_min, _CHUNK))
    if rows_min <= rows_per_tile and rows_min >= 64:
        # Guarantee >= 2 grid steps when there is real work so both v7x TCs are used.
        rows_per_tile = _round_up(-(-rows_min // 2), _CHUNK)
    num_rows = _round_up(rows_min, rows_per_tile)
    e_pad = num_rows * _LANES
    pad = e_pad - e

    # Pad the index arrays (cheap) with edge-mode so pad lanes replicate the last real
    # edge (keeps per-chunk graph-id ranges tight and pad outputs finite), then gather
    # along the last axis of pos^T so the lane-major (3, E_pad) inputs fall straight
    # out of the gather with no extra pad/transpose passes over E-sized f32 data.
    # TODO(synk): if xprof shows the last-axis gather lowering poorly, gather rows of
    # (N,3) instead and transpose on the small side.
    idx_src_p = jnp.pad(idx_src.astype(jnp.int32), (0, pad), mode="edge")
    idx_dst_p = jnp.pad(idx_dst.astype(jnp.int32), (0, pad), mode="edge")

    pos_t = pos.astype(jnp.float32).T                      # (3, N) — tiny transpose
    ps = pos_t[:, idx_src_p].reshape(3, num_rows, _LANES)
    pd = pos_t[:, idx_dst_p].reshape(3, num_rows, _LANES)
    # cell_shift holds tiny integers -> ship as int8 (3 B/edge instead of 12).
    sh = jnp.pad(cell_shift.astype(jnp.int8),
                 ((0, pad), (0, 0))).T.reshape(3, num_rows, _LANES)

    # Graph id of the source atom per edge.  Edges whose graph id >= cell.shape[0]
    # (malformed input) silently get no cell contribution instead of garbage-indexing.
    g_flat = batch.astype(jnp.int32)[idx_src_p]            # (e_pad,)
    g = g_flat.reshape(1, num_rows, _LANES)
    # Per-chunk graph-id range for the in-kernel graph loop (tiny, lives in SMEM).
    gc = g_flat.reshape(-1, _CHUNK * _LANES)
    g_lo = jnp.min(gc, axis=1).astype(jnp.int32)           # (num_rows // 32,)
    g_hi = jnp.max(gc, axis=1).astype(jnp.int32)

    cell_flat = cell.astype(jnp.float32).reshape(-1)       # (B*9,) — lives in SMEM

    grid = (num_rows // rows_per_tile,)
    smem_spec = pl.BlockSpec(memory_space=pltpu.MemorySpace.SMEM)
    out = pl.pallas_call(
        _edge_kernel,
        out_shape=jax.ShapeDtypeStruct((4, num_rows, _LANES), jnp.float32),
        grid_spec=pltpu.PrefetchScalarGridSpec(
            num_scalar_prefetch=0,
            grid=grid,
            in_specs=[
                smem_spec,                                               # cell  (B*9,)
                smem_spec,                                               # g_lo  (C,)
                smem_spec,                                               # g_hi  (C,)
                pl.BlockSpec((3, rows_per_tile, _LANES), lambda i: (0, i, 0)),   # ps
                pl.BlockSpec((3, rows_per_tile, _LANES), lambda i: (0, i, 0)),   # pd
                pl.BlockSpec((3, rows_per_tile, _LANES), lambda i: (0, i, 0)),   # sh int8
                pl.BlockSpec((1, rows_per_tile, _LANES), lambda i: (0, i, 0)),   # g  int32
            ],
            out_specs=pl.BlockSpec((4, rows_per_tile, _LANES),
                                   lambda i: (0, i, 0)),
        ),
        compiler_params=pltpu.CompilerParams(
            dimension_semantics=("parallel",)),
    )(cell_flat, g_lo, g_hi, ps, pd, sh, g)

    out = out.reshape(4, e_pad)
    # NOTE: padded lanes produce finite garbage (sliced off here); a future backward
    # or fused normalization must keep them masked to avoid 1/length issues.
    edge_length = out[3, :e]
    if transpose_out:
        edge_vec = out[:3, :e].T                           # (E, 3) — module contract
    else:
        edge_vec = out[:3, :e]                             # lane-major (3, E): saves a
        # full ~28 B/edge HBM pass when the downstream consumer accepts this layout.
    return edge_vec, edge_length


# ---------------------------------------------------------------------------
# EdgePreprocess forward
# ---------------------------------------------------------------------------
def edge_preprocess(data, is_stress=True):
    cell = data["cell"].reshape(-1, 3, 3)                  # (B, 3, 3)
    num_batch = cell.shape[0]    # static (== batch.max()+1 for well-formed batches)

    if is_stress:
        # TODO(synk): strain.requires_grad_() / stress autograd hook has no Pallas
        # equivalent; strain == 0 makes the pos/cell strain updates exact forward
        # no-ops, so only the zero '_strain' tensor is materialized here.
        data["_strain"] = jnp.zeros((num_batch, 3, 3), dtype=data["pos"].dtype)

    edge_vec, edge_length = _edge_forward(
        cell, data["cell_shift"], data["pos"], data["batch"],
        data["edge_index"][0], data["edge_index"][1])

    data["edge_vec"] = edge_vec
    data["edge_length"] = edge_length
    return data


# ---------------------------------------------------------------------------
# Pure-JAX reference for validation
# ---------------------------------------------------------------------------
def _reference(data):
    cell = data["cell"].reshape(-1, 3, 3).astype(jnp.float32)
    pos = data["pos"].astype(jnp.float32)
    batch = data["batch"]
    idx_src = data["edge_index"][0]
    idx_dst = data["edge_index"][1]
    edge_vec = pos[idx_dst] - pos[idx_src]
    edge_vec = edge_vec + jnp.einsum(
        "ni,nij->nj", data["cell_shift"].astype(jnp.float32), cell[batch[idx_src]])
    return edge_vec, jnp.linalg.norm(edge_vec, axis=-1)


if __name__ == "__main__":
    key = jax.random.PRNGKey(0)
    k1, k2, k3, k4, k5 = jax.random.split(key, 5)

    num_batch = 2
    num_atoms = 16          # 8 atoms per graph
    num_edges = 40

    pos = jax.random.uniform(k1, (num_atoms, 3), dtype=jnp.float32) * 5.0
    cell = jnp.eye(3, dtype=jnp.float32)[None] * 5.0 \
        + 0.1 * jax.random.normal(k2, (num_batch, 3, 3), dtype=jnp.float32)
    batch = jnp.repeat(jnp.arange(num_batch, dtype=jnp.int32),
                       num_atoms // num_batch)

    # edges stay within their own graph
    src_local = jax.random.randint(k3, (num_edges,), 0, num_atoms // num_batch)
    dst_local = jax.random.randint(k4, (num_edges,), 0, num_atoms // num_batch)
    graph_of_edge = jnp.repeat(jnp.arange(num_batch, dtype=jnp.int32),
                               num_edges // num_batch)
    offset = graph_of_edge * (num_atoms // num_batch)
    edge_index = jnp.stack([src_local + offset, dst_local + offset]).astype(jnp.int32)

    cell_shift = jax.random.randint(k5, (num_edges, 3), -1, 2).astype(jnp.float32)

    data = {
        "cell": cell,
        "cell_shift": cell_shift,
        "pos": pos,
        "batch": batch,
        "edge_index": edge_index,
    }

    out = edge_preprocess(dict(data), is_stress=True)
    edge_vec = jax.block_until_ready(out["edge_vec"])
    edge_len = jax.block_until_ready(out["edge_length"])

    ref_vec, ref_len = _reference(data)
    assert edge_vec.shape == (num_edges, 3)
    assert edge_len.shape == (num_edges,)
    assert jnp.allclose(edge_vec, ref_vec, atol=1e-5, rtol=1e-5)
    assert jnp.allclose(edge_len, ref_len, atol=1e-5, rtol=1e-5)

    print("KERNEL_OK")
</pallas_src>

<mosaic_0001>
module attributes {stable_mosaic.version = 11 : i64} {
  func.func @_edge_kernel(%arg0: i32, %arg1: memref<18xf32, #tpu.memory_space<smem>>, %arg2: memref<1xi32, #tpu.memory_space<smem>>, %arg3: memref<1xi32, #tpu.memory_space<smem>>, %arg4: memref<3x32x128xf32, #tpu.memory_space<vmem>>, %arg5: memref<3x32x128xf32, #tpu.memory_space<vmem>>, %arg6: memref<3x32x128xi8, #tpu.memory_space<vmem>>, %arg7: memref<1x32x128xi32, #tpu.memory_space<vmem>>, %arg8: memref<4x32x128xf32, #tpu.memory_space<vmem>>) attributes {dimension_semantics = [#tpu.dimension_semantics<parallel>], iteration_bounds = array<i64: 1>, scalar_prefetch = 0 : i64, scratch_operands = 0 : i64, tpu.core_type = #tpu.core_type<tc>, window_params = [{transform_indices = @transform_0, window_bounds = array<i64: 18>}, {transform_indices = @transform_1, window_bounds = array<i64: 1>}, {transform_indices = @transform_2, window_bounds = array<i64: 1>}, {transform_indices = @transform_3, window_bounds = array<i64: 3, 32, 128>}, {transform_indices = @transform_4, window_bounds = array<i64: 3, 32, 128>}, {transform_indices = @transform_5, window_bounds = array<i64: 3, 32, 128>}, {transform_indices = @transform_6, window_bounds = array<i64: 1, 32, 128>}, {transform_indices = @transform_7, window_bounds = array<i64: 4, 32, 128>}]} {
    %c0_i32 = arith.constant 0 : i32
    %c32_i32 = arith.constant 32 : i32
    %0 = arith.muli %c0_i32, %c32_i32 : i32
    %1 = tpu.assume_multiple %0, 32 : i32
    %c0 = arith.constant 0 : index
    %2 = arith.index_cast %1 : i32 to index
    %c0_0 = arith.constant 0 : index
    %3 = vector.load %arg6[%c0, %2, %c0_0] : memref<3x32x128xi8, #tpu.memory_space<vmem>>, vector<1x32x128xi8>
    %4 = vector.shape_cast %3 : vector<1x32x128xi8> to vector<32x128xi8>
    %5 = arith.sitofp %4 : vector<32x128xi8> to vector<32x128xf32>
    %c1 = arith.constant 1 : index
    %6 = arith.index_cast %1 : i32 to index
    %c0_1 = arith.constant 0 : index
    %7 = vector.load %arg6[%c1, %6, %c0_1] : memref<3x32x128xi8, #tpu.memory_space<vmem>>, vector<1x32x128xi8>
    %8 = vector.shape_cast %7 : vector<1x32x128xi8> to vector<32x128xi8>
    %9 = arith.sitofp %8 : vector<32x128xi8> to vector<32x128xf32>
    %c2 = arith.constant 2 : index
    %10 = arith.index_cast %1 : i32 to index
    %c0_2 = arith.constant 0 : index
    %11 = vector.load %arg6[%c2, %10, %c0_2] : memref<3x32x128xi8, #tpu.memory_space<vmem>>, vector<1x32x128xi8>
    %12 = vector.shape_cast %11 : vector<1x32x128xi8> to vector<32x128xi8>
    %13 = arith.sitofp %12 : vector<32x128xi8> to vector<32x128xf32>
    %c0_3 = arith.constant 0 : index
    %14 = arith.index_cast %1 : i32 to index
    %c0_4 = arith.constant 0 : index
    %15 = vector.load %arg7[%c0_3, %14, %c0_4] : memref<1x32x128xi32, #tpu.memory_space<vmem>>, vector<1x32x128xi32>
    %16 = vector.shape_cast %15 : vector<1x32x128xi32> to vector<32x128xi32>
    %cst = arith.constant 0.000000e+00 : f32
    %17 = vector.broadcast %cst : f32 to vector<32x128xf32>
    %cst_5 = arith.constant 0.000000e+00 : f32
    %18 = vector.broadcast %cst_5 : f32 to vector<32x128xf32>
    %cst_6 = arith.constant 0.000000e+00 : f32
    %19 = vector.broadcast %cst_6 : f32 to vector<32x128xf32>
    %c1_i32 = arith.constant 1 : i32
    %20 = arith.muli %arg0, %c1_i32 : i32
    %21 = arith.addi %20, %c0_i32 : i32
    %22 = arith.index_cast %21 : i32 to index
    %23 = memref.load %arg2[%22] : memref<1xi32, #tpu.memory_space<smem>>
    %24 = arith.index_cast %21 : i32 to index
    %25 = memref.load %arg3[%24] : memref<1xi32, #tpu.memory_space<smem>>
    %c1_i32_7 = arith.constant 1 : i32
    %26 = arith.addi %25, %c1_i32_7 : i32
    %27 = arith.subi %26, %23 : i32
    %28 = arith.addi %23, %27 : i32
    %c1_i32_8 = arith.constant 1 : i32
    %29:3 = scf.for %arg9 = %23 to %28 step %c1_i32_8 iter_args(%arg10 = %17, %arg11 = %18, %arg12 = %19) -> (vector<32x128xf32>, vector<32x128xf32>, vector<32x128xf32>)  : i32 {
      %76 = vector.broadcast %arg9 : i32 to vector<32x128xi32>
      %77 = arith.cmpi eq, %16, %76 : vector<32x128xi32>
      %78 = arith.extui %77 : vector<32x128xi1> to vector<32x128xi32>
      %79 = arith.sitofp %78 : vector<32x128xi32> to vector<32x128xf32>
      %80 = arith.mulf %79, %5 : vector<32x128xf32>
      %81 = arith.mulf %79, %9 : vector<32x128xf32>
      %82 = arith.mulf %79, %13 : vector<32x128xf32>
      %c9_i32 = arith.constant 9 : i32
      %83 = arith.muli %arg9, %c9_i32 : i32
      %c0_i32_29 = arith.constant 0 : i32
      %84 = arith.addi %83, %c0_i32_29 : i32
      %85 = arith.index_cast %84 : i32 to index
      %86 = memref.load %arg1[%85] : memref<18xf32, #tpu.memory_space<smem>>
      %87 = vector.broadcast %86 : f32 to vector<32x128xf32>
      %88 = arith.mulf %80, %87 : vector<32x128xf32>
      %89 = arith.addf %arg10, %88 : vector<32x128xf32>
      %c3_i32 = arith.constant 3 : i32
      %90 = arith.addi %83, %c3_i32 : i32
      %91 = arith.index_cast %90 : i32 to index
      %92 = memref.load %arg1[%91] : memref<18xf32, #tpu.memory_space<smem>>
      %93 = vector.broadcast %92 : f32 to vector<32x128xf32>
      %94 = arith.mulf %81, %93 : vector<32x128xf32>
      %95 = arith.addf %89, %94 : vector<32x128xf32>
      %c6_i32 = arith.constant 6 : i32
      %96 = arith.addi %83, %c6_i32 : i32
      %97 = arith.index_cast %96 : i32 to index
      %98 = memref.load %arg1[%97] : memref<18xf32, #tpu.memory_space<smem>>
      %99 = vector.broadcast %98 : f32 to vector<32x128xf32>
      %100 = arith.mulf %82, %99 : vector<32x128xf32>
      %101 = arith.addf %95, %100 : vector<32x128xf32>
      %c1_i32_30 = arith.constant 1 : i32
      %102 = arith.addi %83, %c1_i32_30 : i32
      %103 = arith.index_cast %102 : i32 to index
      %104 = memref.load %arg1[%103] : memref<18xf32, #tpu.memory_space<smem>>
      %105 = vector.broadcast %104 : f32 to vector<32x128xf32>
      %106 = arith.mulf %80, %105 : vector<32x128xf32>
      %107 = arith.addf %arg11, %106 : vector<32x128xf32>
      %c4_i32 = arith.constant 4 : i32
      %108 = arith.addi %83, %c4_i32 : i32
      %109 = arith.index_cast %108 : i32 to index
      %110 = memref.load %arg1[%109] : memref<18xf32, #tpu.memory_space<smem>>
      %111 = vector.broadcast %110 : f32 to vector<32x128xf32>
      %112 = arith.mulf %81, %111 : vector<32x128xf32>
      %113 = arith.addf %107, %112 : vector<32x128xf32>
      %c7_i32 = arith.constant 7 : i32
      %114 = arith.addi %83, %c7_i32 : i32
      %115 = arith.index_cast %114 : i32 to index
      %116 = memref.load %arg1[%115] : memref<18xf32, #tpu.memory_space<smem>>
      %117 = vector.broadcast %116 : f32 to vector<32x128xf32>
      %118 = arith.mulf %82, %117 : vector<32x128xf32>
      %119 = arith.addf %113, %118 : vector<32x128xf32>
      %c2_i32 = arith.constant 2 : i32
      %120 = arith.addi %83, %c2_i32 : i32
      %121 = arith.index_cast %120 : i32 to index
      %122 = memref.load %arg1[%121] : memref<18xf32, #tpu.memory_space<smem>>
      %123 = vector.broadcast %122 : f32 to vector<32x128xf32>
      %124 = arith.mulf %80, %123 : vector<32x128xf32>
      %125 = arith.addf %arg12, %124 : vector<32x128xf32>
      %c5_i32 = arith.constant 5 : i32
      %126 = arith.addi %83, %c5_i32 : i32
      %127 = arith.index_cast %126 : i32 to index
      %128 = memref.load %arg1[%127] : memref<18xf32, #tpu.memory_space<smem>>
      %129 = vector.broadcast %128 : f32 to vector<32x128xf32>
      %130 = arith.mulf %81, %129 : vector<32x128xf32>
      %131 = arith.addf %125, %130 : vector<32x128xf32>
      %c8_i32 = arith.constant 8 : i32
      %132 = arith.addi %83, %c8_i32 : i32
      %133 = arith.index_cast %132 : i32 to index
      %134 = memref.load %arg1[%133] : memref<18xf32, #tpu.memory_space<smem>>
      %135 = vector.broadcast %134 : f32 to vector<32x128xf32>
      %136 = arith.mulf %82, %135 : vector<32x128xf32>
      %137 = arith.addf %131, %136 : vector<32x128xf32>
      scf.yield %101, %119, %137 : vector<32x128xf32>, vector<32x128xf32>, vector<32x128xf32>
    }
    %c0_9 = arith.constant 0 : index
    %30 = arith.index_cast %1 : i32 to index
    %c0_10 = arith.constant 0 : index
    %31 = vector.load %arg5[%c0_9, %30, %c0_10] : memref<3x32x128xf32, #tpu.memory_space<vmem>>, vector<1x32x128xf32>
    %32 = vector.shape_cast %31 : vector<1x32x128xf32> to vector<32x128xf32>
    %c0_11 = arith.constant 0 : index
    %33 = arith.index_cast %1 : i32 to index
    %c0_12 = arith.constant 0 : index
    %34 = vector.load %arg4[%c0_11, %33, %c0_12] : memref<3x32x128xf32, #tpu.memory_space<vmem>>, vector<1x32x128xf32>
    %35 = vector.shape_cast %34 : vector<1x32x128xf32> to vector<32x128xf32>
    %36 = arith.subf %32, %35 : vector<32x128xf32>
    %37 = arith.addf %36, %29#0 : vector<32x128xf32>
    %c1_13 = arith.constant 1 : index
    %38 = arith.index_cast %1 : i32 to index
    %c0_14 = arith.constant 0 : index
    %39 = vector.load %arg5[%c1_13, %38, %c0_14] : memref<3x32x128xf32, #tpu.memory_space<vmem>>, vector<1x32x128xf32>
    %40 = vector.shape_cast %39 : vector<1x32x128xf32> to vector<32x128xf32>
    %c1_15 = arith.constant 1 : index
    %41 = arith.index_cast %1 : i32 to index
    %c0_16 = arith.constant 0 : index
    %42 = vector.load %arg4[%c1_15, %41, %c0_16] : memref<3x32x128xf32, #tpu.memory_space<vmem>>, vector<1x32x128xf32>
    %43 = vector.shape_cast %42 : vector<1x32x128xf32> to vector<32x128xf32>
    %44 = arith.subf %40, %43 : vector<32x128xf32>
    %45 = arith.addf %44, %29#1 : vector<32x128xf32>
    %c2_17 = arith.constant 2 : index
    %46 = arith.index_cast %1 : i32 to index
    %c0_18 = arith.constant 0 : index
    %47 = vector.load %arg5[%c2_17, %46, %c0_18] : memref<3x32x128xf32, #tpu.memory_space<vmem>>, vector<1x32x128xf32>
    %48 = vector.shape_cast %47 : vector<1x32x128xf32> to vector<32x128xf32>
    %c2_19 = arith.constant 2 : index
    %49 = arith.index_cast %1 : i32 to index
    %c0_20 = arith.constant 0 : index
    %50 = vector.load %arg4[%c2_19, %49, %c0_20] : memref<3x32x128xf32, #tpu.memory_space<vmem>>, vector<1x32x128xf32>
    %51 = vector.shape_cast %50 : vector<1x32x128xf32> to vector<32x128xf32>
    %52 = arith.subf %48, %51 : vector<32x128xf32>
    %53 = arith.addf %52, %29#2 : vector<32x128xf32>
    %c0_21 = arith.constant 0 : index
    %54 = arith.index_cast %1 : i32 to index
    %c0_22 = arith.constant 0 : index
    %55 = vector.load %arg8[%c0_21, %54, %c0_22] : memref<4x32x128xf32, #tpu.memory_space<vmem>>, vector<1x32x128xf32>
    %56 = vector.shape_cast %55 : vector<1x32x128xf32> to vector<32x128xf32>
    %57 = vector.shape_cast %37 : vector<32x128xf32> to vector<1x32x128xf32>
    tpu.vector_store %arg8[%c0_21, %54, %c0_22], %57 {strides = array<i32>} : memref<4x32x128xf32, #tpu.memory_space<vmem>>, vector<1x32x128xf32>,
    %c1_23 = arith.constant 1 : index
    %58 = arith.index_cast %1 : i32 to index
    %c0_24 = arith.constant 0 : index
    %59 = vector.load %arg8[%c1_23, %58, %c0_24] : memref<4x32x128xf32, #tpu.memory_space<vmem>>, vector<1x32x128xf32>
    %60 = vector.shape_cast %59 : vector<1x32x128xf32> to vector<32x128xf32>
    %61 = vector.shape_cast %45 : vector<32x128xf32> to vector<1x32x128xf32>
    tpu.vector_store %arg8[%c1_23, %58, %c0_24], %61 {strides = array<i32>} : memref<4x32x128xf32, #tpu.memory_space<vmem>>, vector<1x32x128xf32>,
    %c2_25 = arith.constant 2 : index
    %62 = arith.index_cast %1 : i32 to index
    %c0_26 = arith.constant 0 : index
    %63 = vector.load %arg8[%c2_25, %62, %c0_26] : memref<4x32x128xf32, #tpu.memory_space<vmem>>, vector<1x32x128xf32>
    %64 = vector.shape_cast %63 : vector<1x32x128xf32> to vector<32x128xf32>
    %65 = vector.shape_cast %53 : vector<32x128xf32> to vector<1x32x128xf32>
    tpu.vector_store %arg8[%c2_25, %62, %c0_26], %65 {strides = array<i32>} : memref<4x32x128xf32, #tpu.memory_space<vmem>>, vector<1x32x128xf32>,
    %66 = arith.mulf %37, %37 : vector<32x128xf32>
    %67 = arith.mulf %45, %45 : vector<32x128xf32>
    %68 = arith.addf %66, %67 : vector<32x128xf32>
    %69 = arith.mulf %53, %53 : vector<32x128xf32>
    %70 = arith.addf %68, %69 : vector<32x128xf32>
    %71 = math.sqrt %70 : vector<32x128xf32>
    %c3 = arith.constant 3 : index
    %72 = arith.index_cast %1 : i32 to index
    %c0_27 = arith.constant 0 : index
    %73 = vector.load %arg8[%c3, %72, %c0_27] : memref<4x32x128xf32, #tpu.memory_space<vmem>>, vector<1x32x128xf32>
    %74 = vector.shape_cast %73 : vector<1x32x128xf32> to vector<32x128xf32>
    %75 = vector.shape_cast %71 : vector<32x128xf32> to vector<1x32x128xf32>
    tpu.vector_store %arg8[%c3, %72, %c0_27], %75 {strides = array<i32>} : memref<4x32x128xf32, #tpu.memory_space<vmem>>, vector<1x32x128xf32>,
    %c1_i32_28 = arith.constant 1 : i32
    return
  }
  func.func @transform_0(%arg0: i32) -> i32 {
    %c0_i32 = arith.constant 0 : i32
    %c0_i32_0 = arith.constant 0 : i32
    return %c0_i32 : i32
  }
  func.func @transform_1(%arg0: i32) -> i32 {
    %c0_i32 = arith.constant 0 : i32
    %c0_i32_0 = arith.constant 0 : i32
    return %c0_i32 : i32
  }
  func.func @transform_2(%arg0: i32) -> i32 {
    %c0_i32 = arith.constant 0 : i32
    %c0_i32_0 = arith.constant 0 : i32
    return %c0_i32 : i32
  }
  func.func @transform_3(%arg0: i32) -> (i32, i32, i32) {
    %c0_i32 = arith.constant 0 : i32
    %c0_i32_0 = arith.constant 0 : i32
    %c0_i32_1 = arith.constant 0 : i32
    return %c0_i32, %arg0, %c0_i32_0 : i32, i32, i32
  }
  func.func @transform_4(%arg0: i32) -> (i32, i32, i32) {
    %c0_i32 = arith.constant 0 : i32
    %c0_i32_0 = arith.constant 0 : i32
    %c0_i32_1 = arith.constant 0 : i32
    return %c0_i32, %arg0, %c0_i32_0 : i32, i32, i32
  }
  func.func @transform_5(%arg0: i32) -> (i32, i32, i32) {
    %c0_i32 = arith.constant 0 : i32
    %c0_i32_0 = arith.constant 0 : i32
    %c0_i32_1 = arith.constant 0 : i32
    return %c0_i32, %arg0, %c0_i32_0 : i32, i32, i32
  }
  func.func @transform_6(%arg0: i32) -> (i32, i32, i32) {
    %c0_i32 = arith.constant 0 : i32
    %c0_i32_0 = arith.constant 0 : i32
    %c0_i32_1 = arith.constant 0 : i32
    return %c0_i32, %arg0, %c0_i32_0 : i32, i32, i32
  }
  func.func @transform_7(%arg0: i32) -> (i32, i32, i32) {
    %c0_i32 = arith.constant 0 : i32
    %c0_i32_0 = arith.constant 0 : i32
    %c0_i32_1 = arith.constant 0 : i32
    return %c0_i32, %arg0, %c0_i32_0 : i32, i32, i32
  }
}

</mosaic_0001>

<bundles_post_ra>
// kernel: _edge_forward.1
= control target key start
LH: loop header
LB: loop body
LE: loop exit
PB: predicated region body
PF: predicated region fallthrough
CT: control target
= control target key end

     0   :  { %14 = vsyncpa [#allocation5], 0  ;;  %s1400_s0 = inlined_call_operand.vmem [shape: f32[18], index: 0, kind: input, shape index: {}]   ;;  %s1401_s1 = inlined_call_operand.<no memory space> [shape: s32[1], index: 1, kind: input, shape index: {}]   ;;  %s1402_s2 = inlined_call_operand.<no memory space> [shape: s32[1], index: 2, kind: input, shape index: {}]   ;;  %s1403_s3 = inlined_call_operand.vmem [shape: f32[3,32,128], index: 3, kind: input, shape index: {}]   ;;  %s1404_s4 = inlined_call_operand.vmem [shape: f32[3,32,128], index: 4, kind: input, shape index: {}]   ;;  %s1405_s5 = inlined_call_operand.vmem [shape: s8[3,32,128], index: 5, kind: input, shape index: {}]   ;;  %s1406_s6 = inlined_call_operand.vmem [shape: s32[1,32,128], index: 6, kind: input, shape index: {}]   ;;  %s1407_s7 = inlined_call_operand.vmem [shape: f32[4,32,128], index: 7, kind: output, shape index: {}]  }
   0x1   :  { %s21_s26 = sshll.u32 %s1400_s0, 4  ;;  %s22_s26 = int_to_ptr.vmem [resolvable:$true] %s21_s26 }
   0x2   :  { %s644_s27 = scalar_lea.vmem %s22_s26, 16  ;;  %p649_p1 = scmp.lt.s32.totalorder %s22_s26, %s22_s26 }
   0x3   :  { %p645_p0 = scmp.ne.s32.totalorder %s22_s26, %s644_s27  ;;  %p650_p2 = scmp.lt.s32.totalorder %s644_s27, %s644_s27 }
   0x5   :  { %p651_p3 = por %p650_p2, %p649_p1 }
   0x7   :  { %p652_p4 = pnand %p651_p3, %p645_p0 }
   0x9   :  { %655 = shalt.err (!%p652_p4)
}
   0xa   :  { %s858_s28 = smov [#allocation4]  }
   0xb   :  { %24 = dma.vmem_to_smem %s22_s26, 16, %s858_s28, [#allocation5]  }
   0xc   :  { %756 = dma.done.wait [#allocation5], 16  }
   0xd   :  { %757 = vsyncadd [#allocation5], 4294967280 }
   0xe   :  { %40 = sfence }
   0xf   :  { %v41_v0 = vld [vmem:[%s1405_s5] sm:$0xff]  ;;  %v400_v1 = vld [vmem:[%s1405_s5 + $0x8] sm:$0xff]  ;;  %s80_s11 = sadd.s32 1, %s1402_s2  ;;  %v925_v8 = vld [vmem:[%s1406_s6 + $0x10] sm:$0xff]  ;;  %v966_v31 = vmov 0.0   ;;  %v968_v32 = vmov 0.0  }
  0x10   :  { %v42_v2 = vunpack.c.0.s8 %v41_v0  ;;  %v43_v3 = vunpack.c.1.s8 %v41_v0  ;;  %v44_v4 = vunpack.c.2.s8 %v41_v0  ;;  %v45_v5 = vunpack.c.3.s8 %v41_v0  ;;  %v915_v6 = vld [vmem:[%s1406_s6] sm:$0xff]  ;;  %v920_v7 = vld [vmem:[%s1406_s6 + $0x8] sm:$0xff]  ;;  %1410 = vst [vmem:[#allocation9_spill] sm:$0xff] %v925_v8  ;;  %v401_v13 = vld [vmem:[%s1405_s5 + $0x10] sm:$0xff]  ;;  %p360_p5 = scmp.ge.s32.totalorder %s1401_s1, %s80_s11 }
  0x11   :  { %1408 = vst [vmem:[#allocation7_spill] sm:$0xff] %v915_v6  ;;  %1409 = vst [vmem:[#allocation8_spill] sm:$0xff] %v920_v7  ;;  %v54_v9 = vunpack.c.0.s8 %v400_v1  ;;  %v55_v10 = vunpack.c.1.s8 %v400_v1  ;;  %v56_v11 = vunpack.c.2.s8 %v400_v1  ;;  %v57_v12 = vunpack.c.3.s8 %v400_v1  ;;  %v933_v14 = vld [vmem:[%s1406_s6 + $0x18] sm:$0xff] }
  0x12   :  { %v935_v15 = vcvt.s32.f32 %v42_v2  ;;  %v937_v16 = vcvt.s32.f32 %v43_v3  ;;  %v939_v17 = vcvt.s32.f32 %v44_v4  ;;  %v941_v18 = vcvt.s32.f32 %v45_v5 }
  0x13   :  { %v943_v19 = vcvt.s32.f32 %v54_v9  ;;  %v945_v20 = vcvt.s32.f32 %v55_v10  ;;  %v947_v21 = vcvt.s32.f32 %v56_v11  ;;  %v949_v22 = vcvt.s32.f32 %v57_v12 }
  0x14   :  { %v66_v23 = vunpack.c.0.s8 %v401_v13  ;;  %v67_v24 = vunpack.c.1.s8 %v401_v13  ;;  %v68_v25 = vunpack.c.2.s8 %v401_v13  ;;  %v69_v26 = vunpack.c.3.s8 %v401_v13  ;;  %373 = sbr.rel (%p360_p5) target bundleno = 64 (0x40), region = 62 }
  0x15   :  { %v970_v33 = vmov 0.0   ;;  %v972_v34 = vmov 0.0   ;;  %v974_v35 = vmov 0.0   ;;  %v976_v36 = vmov 0.0  }
  0x16   :  { %v951_v27 = vcvt.s32.f32 %v66_v23  ;;  %v953_v28 = vcvt.s32.f32 %v67_v24  ;;  %v955_v29 = vcvt.s32.f32 %v68_v25  ;;  %v957_v30 = vcvt.s32.f32 %v69_v26 }
  0x17   :  { %v978_v37 = vmov 0.0   ;;  %v980_v38 = vmov 0.0   ;;  %v982_v39 = vmov 0.0   ;;  %v984_v40 = vmov 0.0  }
  0x18   :  { %v986_v41 = vmov 0.0   ;;  %v988_v42 = vmov 0.0  }
  0x19   :  { %v990_v43 = vmov 0.0   ;;  %v992_v44 = vmov 0.0   ;;  %v994_v45 = vmov 0.0   ;;  %v996_v46 = vmov 0.0  }
  0x1a   :  { %v998_v47 = vmov 0.0   ;;  %v1000_v48 = vmov 0.0   ;;  %v1002_v49 = vmov 0.0   ;;  %v1004_v50 = vmov 0.0  }
  0x1b   :  { %v1006_v51 = vmov 0.0   ;;  %v1008_v52 = vmov 0.0   ;;  %v1010_v53 = vmov 0.0   ;;  %v1012_v54 = vmov 0.0  }
  0x1c LB: > { %s1051_s26 = smul.u32 9, %s808_s1  ;;  %v99_v55 = vstv %s808_s1  ;;  %v1411_v6 = vld [vmem:[#allocation7_spill] sm:$0xff]  ;;  %v1412_v7 = vld [vmem:[#allocation8_spill] sm:$0xff]  ;;  %v1413_v8 = vld [vmem:[#allocation9_spill] sm:$0xff]  ;;  %v859_v56 = vmov 0.0   ;;  %s84_s1 = sadd.s32 1, %s808_s1   ;;  %s808_s1 = sphi %s1401_s1, %s84_s1   ;;  %v804_v54 = vphi %v1012_v54, %v1430_v54   ;;  %v800_v53 = vphi %v1010_v53, %v1429_v53   ;;  %v796_v52 = vphi %v1008_v52, %v1428_v52   ;;  %v792_v51 = vphi %v1006_v51, %v1427_v51   ;;  %v788_v50 = vphi %v1004_v50, %v1426_v50   ;;  %v784_v49 = vphi %v1002_v49, %v1425_v49   ;;  %v780_v48 = vphi %v1000_v48, %v1424_v48   ;;  %v776_v47 = vphi %v998_v47, %v1423_v47   ;;  %v772_v46 = vphi %v996_v46, %v1422_v46   ;;  %v768_v45 = vphi %v994_v45, %v1421_v45   ;;  %v764_v44 = vphi %v992_v44, %v1420_v44   ;;  %v760_v43 = vphi %v990_v43, %v1419_v43  }
  0x1d   : > { %vm100_vm0 = vcmp.eq.s32.totalorder %v1411_v6, %v99_v55  ;;  %vm101_vm1 = vcmp.eq.s32.totalorder %v1412_v7, %v99_v55  ;;  %vm102_vm2 = vcmp.eq.s32.totalorder %v1413_v8, %v99_v55  ;;  %vm103_vm3 = vcmp.eq.s32.totalorder %v933_v14, %v99_v55  ;;  %p1187_p6 = scmp.ge.s32.totalorder %s84_s1, %s80_s11 }
  0x1e   : > { %s1054_s27 = sld [smem:[#allocation4 + %s1051_s26]]  ;;  %s135_s28 = sadd.s32 3, %s1051_s26  ;;  %v402_v57 = vsel %vm100_vm0, 1.0, %v859_v56  ;;  %v403_v58 = vsel %vm101_vm1, 1.0, %v859_v56  ;;  %v404_v59 = vsel %vm102_vm2, 1.0, %v859_v56  ;;  %v405_v60 = vsel %vm103_vm3, 1.0, %v859_v56 }
  0x1f   : > { %s1057_s29 = sld [smem:[#allocation4 + %s135_s28]]  ;;  %s146_s30 = sadd.s32 6, %s1051_s26  ;;  %v1075_v61 = vmul.f32 %v402_v57, %v935_v15  ;;  %v1078_v62 = vmul.f32 %v403_v58, %v937_v16  ;;  %v1081_v63 = vmul.f32 %v404_v59, %v939_v17  ;;  %v1084_v0 = vmul.f32 %v405_v60, %v941_v18 }
  0x20   : > { %s1061_s8 = sld [smem:[#allocation4 + %s146_s30]]  ;;  %s157_s9 = sadd.s32 1, %s1051_s26  ;;  %v1090_v1 = vmul.f32 %v402_v57, %v943_v19  ;;  %v1093_v2 = vmul.f32 %v403_v58, %v945_v20  ;;  %v1096_v3 = vmul.f32 %v404_v59, %v947_v21  ;;  %v1099_v4 = vmul.f32 %v405_v60, %v949_v22 }
  0x21   : > { %s1068_s0 = sld [smem:[#allocation4 + %s157_s9]]  ;;  %s168_s10 = sadd.s32 4, %s1051_s26  ;;  %v1104_v5 = vmul.f32 %v402_v57, %v951_v27  ;;  %v1107_v9 = vmul.f32 %v403_v58, %v953_v28  ;;  %v1110_v10 = vmul.f32 %v404_v59, %v955_v29  ;;  %v1113_v11 = vmul.f32 %v405_v60, %v957_v30 }
  0x22   : > { %s1071_s12 = sld [smem:[#allocation4 + %s168_s10]]  ;;  %s179_s13 = sadd.s32 7, %s1051_s26 }
  0x23   : > { %s1086_s14 = sld [smem:[#allocation4 + %s179_s13]]  ;;  %s190_s15 = sadd.s32 2, %s1051_s26 }
  0x24   : > { %s1101_s16 = sld [smem:[#allocation4 + %s190_s15]]  ;;  %v126_v12 = vstv %s1054_s27  ;;  %s201_s17 = sadd.s32 5, %s1051_s26 }
  0x25   : > { %v137_v13 = vstv %s1057_s29  ;;  %v127_v24 = vmul.f32 %v126_v12, %v1075_v61  ;;  %v128_v25 = vmul.f32 %v126_v12, %v1078_v62  ;;  %v129_v26 = vmul.f32 %v126_v12, %v1081_v63  ;;  %s212_s18 = sadd.s32 8, %s1051_s26  ;;  %s1144_s19 = sld [smem:[#allocation4 + %s201_s17]] }
  0x26   : > { %v148_v23 = vstv %s1061_s8  ;;  %v130_v31 = vmul.f32 %v126_v12, %v1084_v0  ;;  %v138_v32 = vmul.f32 %v137_v13, %v1090_v1  ;;  %v139_v33 = vmul.f32 %v137_v13, %v1093_v2  ;;  %s1150_s20 = sld [smem:[#allocation4 + %s212_s18]] }
  0x27   : > { %v140_v34 = vmul.f32 %v137_v13, %v1096_v3  ;;  %v141_v35 = vmul.f32 %v137_v13, %v1099_v4  ;;  %v131_v36 = vadd.f32 %v804_v54, %v127_v24  ;;  %v132_v37 = vadd.f32 %v800_v53, %v128_v25 }
  0x28   : > { %v133_v38 = vadd.f32 %v796_v52, %v129_v26  ;;  %v134_v39 = vadd.f32 %v792_v51, %v130_v31  ;;  %v149_v40 = vmul.f32 %v148_v23, %v1104_v5  ;;  %v150_v41 = vmul.f32 %v148_v23, %v1107_v9 }
  0x29   : > { %v151_v42 = vmul.f32 %v148_v23, %v1110_v10  ;;  %v152_v55 = vmul.f32 %v148_v23, %v1113_v11  ;;  %v142_v56 = vadd.f32 %v138_v32, %v131_v36  ;;  %v143_v57 = vadd.f32 %v139_v33, %v132_v37 }
  0x2a   : > { %v144_v58 = vadd.f32 %v140_v34, %v133_v38  ;;  %v145_v59 = vadd.f32 %v141_v35, %v134_v39  ;;  %v159_v54 = vstv %s1068_s0  ;;  %v170_v60 = vstv %s1071_s12 }
  0x2b   : > { %v181_v53 = vstv %s1086_s14  ;;  %v192_v12 = vstv %s1101_s16  ;;  %v1136_v52 = vadd.f32 %v149_v40, %v142_v56   ;;  %v1138_v51 = vadd.f32 %v150_v41, %v143_v57  }
  0x2c   : > { %v160_v23 = vmul.f32 %v159_v54, %v1075_v61  ;;  %v161_v31 = vmul.f32 %v159_v54, %v1078_v62  ;;  %v162_v32 = vmul.f32 %v159_v54, %v1081_v63  ;;  %v163_v33 = vmul.f32 %v159_v54, %v1084_v0 }
  0x2d   : > { %v1414_v13 = vmov %v1136_v52  ;;  %v1415_v24 = vmov %v1138_v51  ;;  %v1140_v52 = vadd.f32 %v151_v42, %v144_v58   ;;  %v1142_v51 = vadd.f32 %v152_v55, %v145_v59  }
  0x2e   : > { %v171_v34 = vmul.f32 %v170_v60, %v1090_v1  ;;  %v172_v35 = vmul.f32 %v170_v60, %v1093_v2  ;;  %v173_v36 = vmul.f32 %v170_v60, %v1096_v3  ;;  %v174_v37 = vmul.f32 %v170_v60, %v1099_v4 }
  0x2f   : > { %v1416_v25 = vmov %v1140_v52  ;;  %v1417_v26 = vmov %v1142_v51  ;;  %v164_v38 = vadd.f32 %v788_v50, %v160_v23  ;;  %v165_v39 = vadd.f32 %v784_v49, %v161_v31 }
  0x30   : > { %v166_v40 = vadd.f32 %v780_v48, %v162_v32  ;;  %v167_v41 = vadd.f32 %v776_v47, %v163_v33  ;;  %v182_v42 = vmul.f32 %v181_v53, %v1104_v5  ;;  %v183_v55 = vmul.f32 %v181_v53, %v1107_v9 }
  0x31   : > { %v184_v56 = vmul.f32 %v181_v53, %v1110_v10  ;;  %v185_v57 = vmul.f32 %v181_v53, %v1113_v11  ;;  %v175_v58 = vadd.f32 %v171_v34, %v164_v38  ;;  %v176_v59 = vadd.f32 %v172_v35, %v165_v39 }
  0x32   : > { %v177_v54 = vadd.f32 %v173_v36, %v166_v40  ;;  %v178_v50 = vadd.f32 %v174_v37, %v167_v41  ;;  %v193_v49 = vmul.f32 %v192_v12, %v1075_v61  ;;  %v194_v48 = vmul.f32 %v192_v12, %v1078_v62 }
  0x33   : > { %v195_v47 = vmul.f32 %v192_v12, %v1081_v63  ;;  %v196_v60 = vmul.f32 %v192_v12, %v1084_v0  ;;  %v186_v23 = vadd.f32 %v182_v42, %v175_v58   ;;  %v187_v6 = vadd.f32 %v183_v55, %v176_v59  }
  0x34   : > { %v188_v7 = vadd.f32 %v184_v56, %v177_v54   ;;  %v189_v8 = vadd.f32 %v185_v57, %v178_v50   ;;  %v197_v53 = vadd.f32 %v772_v46, %v193_v49  ;;  %v198_v52 = vadd.f32 %v768_v45, %v194_v48 }
  0x35   : > { %v199_v51 = vadd.f32 %v764_v44, %v195_v47  ;;  %v200_v31 = vadd.f32 %v760_v43, %v196_v60  ;;  %v203_v32 = vstv %s1144_s19  ;;  %v214_v61 = vstv %s1150_s20 }
  0x36   : > { %v204_v62 = vmul.f32 %v203_v32, %v1090_v1  ;;  %v205_v63 = vmul.f32 %v203_v32, %v1093_v2  ;;  %v206_v0 = vmul.f32 %v203_v32, %v1096_v3  ;;  %v207_v12 = vmul.f32 %v203_v32, %v1099_v4 }
  0x37   : > { %v215_v33 = vmul.f32 %v214_v61, %v1104_v5  ;;  %v216_v46 = vmul.f32 %v214_v61, %v1107_v9  ;;  %v217_v45 = vmul.f32 %v214_v61, %v1110_v10  ;;  %v218_v44 = vmul.f32 %v214_v61, %v1113_v11 }
  0x38   : > { %v208_v34 = vadd.f32 %v204_v62, %v197_v53  ;;  %v209_v43 = vadd.f32 %v205_v63, %v198_v52  ;;  %v210_v35 = vadd.f32 %v206_v0, %v199_v51  ;;  %v211_v36 = vadd.f32 %v207_v12, %v200_v31  ;;  %86 = sbr.rel (!%p1187_p6) target bundleno = 28 (0x1c), region = 68 }
  0x39   : > { %v1423_v47 = vmov %v189_v8  ;;  %v1424_v48 = vmov %v188_v7  ;;  %v1425_v49 = vmov %v187_v6  ;;  %v1426_v50 = vmov %v186_v23 }
  0x3a   : > { %v219_v37 = vadd.f32 %v215_v33, %v208_v34   ;;  %v220_v1 = vadd.f32 %v216_v46, %v209_v43   ;;  %v221_v38 = vadd.f32 %v217_v45, %v210_v35   ;;  %v222_v2 = vadd.f32 %v218_v44, %v211_v36  }
  0x3b   : > { %v1427_v51 = vmov %v1417_v26  ;;  %v1428_v52 = vmov %v1416_v25  ;;  %v1429_v53 = vmov %v1415_v24  ;;  %v1430_v54 = vmov %v1414_v13 }
  0x3c   : > { %v1419_v43 = vmov %v222_v2  ;;  %v1420_v44 = vmov %v221_v38  ;;  %v1421_v45 = vmov %v220_v1  ;;  %v1422_v46 = vmov %v219_v37 }
  0x3d   :  { %v1431_v31 = vmov %v222_v2  ;;  %v1432_v32 = vmov %v221_v38  ;;  %v1433_v33 = vmov %v220_v1  ;;  %v1434_v34 = vmov %v219_v37 }
  0x3e   :  { %v1435_v35 = vmov %v189_v8  ;;  %v1436_v36 = vmov %v188_v7  ;;  %v1437_v37 = vmov %v187_v6  ;;  %v1438_v38 = vmov %v186_v23 }
  0x3f   :  { %v1439_v39 = vmov %v1417_v26  ;;  %v1440_v40 = vmov %v1416_v25  ;;  %v1441_v41 = vmov %v1415_v24  ;;  %v1442_v42 = vmov %v1414_v13 }
  0x40 PF:  { %v223_v6 = vld [vmem:[%s1404_s4] sm:$0xff]  ;;  %v224_v8 = vld [vmem:[%s1404_s4 + $0x8] sm:$0xff]  ;;  %v225_v16 = vld [vmem:[%s1404_s4 + $0x10] sm:$0xff]  ;;  %v856_v42 = vphi %v988_v42, %v1442_v42   ;;  %v852_v41 = vphi %v986_v41, %v1441_v41   ;;  %v848_v40 = vphi %v984_v40, %v1440_v40   ;;  %v844_v39 = vphi %v982_v39, %v1439_v39   ;;  %v840_v38 = vphi %v980_v38, %v1438_v38   ;;  %v836_v37 = vphi %v978_v37, %v1437_v37   ;;  %v832_v36 = vphi %v976_v36, %v1436_v36   ;;  %v828_v35 = vphi %v974_v35, %v1435_v35   ;;  %v824_v34 = vphi %v972_v34, %v1434_v34   ;;  %v820_v33 = vphi %v970_v33, %v1433_v33   ;;  %v816_v32 = vphi %v968_v32, %v1432_v32   ;;  %v812_v31 = vphi %v966_v31, %v1431_v31  }
  0x41   :  { %v227_v7 = vld [vmem:[%s1403_s3] sm:$0xff]  ;;  %v228_v15 = vld [vmem:[%s1403_s3 + $0x8] sm:$0xff]  ;;  %v229_v17 = vld [vmem:[%s1403_s3 + $0x10] sm:$0xff] }
  0x42   :  { %v231_v14 = vsub.f32 %v223_v6, %v227_v7  ;;  %v232_v18 = vsub.f32 %v224_v8, %v228_v15  ;;  %v233_v19 = vsub.f32 %v225_v16, %v229_v17  ;;  %v226_v20 = vld [vmem:[%s1404_s4 + $0x18] sm:$0xff]  ;;  %v406_v22 = vld [vmem:[%s1404_s4 + $0x20] sm:$0xff]  ;;  %v407_v30 = vld [vmem:[%s1404_s4 + $0x28] sm:$0xff] }
  0x43   :  { %v230_v21 = vld [vmem:[%s1403_s3 + $0x18] sm:$0xff]  ;;  %v410_v29 = vld [vmem:[%s1403_s3 + $0x20] sm:$0xff]  ;;  %v411_v3 = vld [vmem:[%s1403_s3 + $0x28] sm:$0xff] }
  0x44   :  { %v235_v27 = vadd.f32 %v856_v42, %v231_v14  ;;  %v234_v28 = vsub.f32 %v226_v20, %v230_v21  ;;  %v236_v4 = vadd.f32 %v852_v41, %v232_v18  ;;  %v237_v5 = vadd.f32 %v848_v40, %v233_v19  ;;  %v408_v11 = vld [vmem:[%s1404_s4 + $0x30] sm:$0xff]  ;;  %v409_v24 = vld [vmem:[%s1404_s4 + $0x38] sm:$0xff]  ;;  %v414_v42 = vld [vmem:[%s1404_s4 + $0x40] sm:$0xff] }
  0x45   :  { %v250_v9 = vsub.f32 %v406_v22, %v410_v29  ;;  %v251_v10 = vsub.f32 %v407_v30, %v411_v3  ;;  %v412_v13 = vld [vmem:[%s1403_s3 + $0x30] sm:$0xff]  ;;  %v413_v41 = vld [vmem:[%s1403_s3 + $0x38] sm:$0xff]  ;;  %v418_v55 = vld [vmem:[%s1403_s3 + $0x40] sm:$0xff] }
  0x46   :  { %277 = vst [vmem:[%s1407_s7] sm:$0xff] %v235_v27  ;;  %v291_v25 = vmul.f32 %v235_v27, %v235_v27  ;;  %v238_v26 = vadd.f32 %v844_v39, %v234_v28  ;;  %v252_v40 = vsub.f32 %v408_v11, %v412_v13  ;;  %278 = vst [vmem:[%s1407_s7 + $0x8] sm:$0xff] %v236_v4  ;;  %v415_v59 = vld [vmem:[%s1404_s4 + $0x48] sm:$0xff]  ;;  %v416_v50 = vld [vmem:[%s1404_s4 + $0x50] sm:$0xff] }
  0x47   :  { %v292_v56 = vmul.f32 %v236_v4, %v236_v4  ;;  %279 = vst [vmem:[%s1407_s7 + $0x10] sm:$0xff] %v237_v5  ;;  %v293_v39 = vmul.f32 %v237_v5, %v237_v5  ;;  %v254_v57 = vadd.f32 %v840_v38, %v250_v9  ;;  %v255_v58 = vadd.f32 %v836_v37, %v251_v10  ;;  %v419_v54 = vld [vmem:[%s1403_s3 + $0x48] sm:$0xff]  ;;  %v420_v23 = vld [vmem:[%s1403_s3 + $0x50] sm:$0xff]  ;;  %v417_v53 = vld [vmem:[%s1404_s4 + $0x58] sm:$0xff] }
  0x48   :  { %280 = vst [vmem:[%s1407_s7 + $0x18] sm:$0xff] %v238_v26  ;;  %v294_v49 = vmul.f32 %v238_v26, %v238_v26  ;;  %v256_v48 = vadd.f32 %v832_v36, %v252_v40  ;;  %v253_v47 = vsub.f32 %v409_v24, %v413_v41  ;;  %v269_v60 = vsub.f32 %v414_v42, %v418_v55  ;;  %v421_v52 = vld [vmem:[%s1403_s3 + $0x58] sm:$0xff] }
  0x49   :  { %422 = vst [vmem:[%s1407_s7 + $0x20] sm:$0xff] %v254_v57  ;;  %v295_v51 = vmul.f32 %v254_v57, %v254_v57  ;;  %423 = vst [vmem:[%s1407_s7 + $0x28] sm:$0xff] %v255_v58  ;;  %v296_v61 = vmul.f32 %v255_v58, %v255_v58  ;;  %v270_v62 = vsub.f32 %v415_v59, %v419_v54 }
  0x4a   :  { %v271_v63 = vsub.f32 %v416_v50, %v420_v23  ;;  %424 = vst [vmem:[%s1407_s7 + $0x30] sm:$0xff] %v256_v48  ;;  %v297_v0 = vmul.f32 %v256_v48, %v256_v48  ;;  %v257_v12 = vadd.f32 %v828_v35, %v253_v47  ;;  %v273_v46 = vadd.f32 %v824_v34, %v269_v60 }
  0x4b   :  { %v272_v45 = vsub.f32 %v417_v53, %v421_v52  ;;  %v299_v44 = vadd.f32 %v295_v51, %v291_v25  ;;  %v300_v43 = vadd.f32 %v296_v61, %v292_v56  ;;  %v274_v36 = vadd.f32 %v820_v33, %v270_v62 }
  0x4c   :  { %v275_v37 = vadd.f32 %v816_v32, %v271_v63  ;;  %v301_v1 = vadd.f32 %v297_v0, %v293_v39  ;;  %425 = vst [vmem:[%s1407_s7 + $0x38] sm:$0xff] %v257_v12  ;;  %v298_v38 = vmul.f32 %v257_v12, %v257_v12  ;;  %426 = vst [vmem:[%s1407_s7 + $0x40] sm:$0xff] %v273_v46 }
  0x4d   :  { %v303_v35 = vmul.f32 %v273_v46, %v273_v46  ;;  %v276_v34 = vadd.f32 %v812_v31, %v272_v45  ;;  %427 = vst [vmem:[%s1407_s7 + $0x48] sm:$0xff] %v274_v36  ;;  %v304_v33 = vmul.f32 %v274_v36, %v274_v36 }
  0x4e   :  { %428 = vst [vmem:[%s1407_s7 + $0x50] sm:$0xff] %v275_v37  ;;  %v305_v32 = vmul.f32 %v275_v37, %v275_v37  ;;  %v302_v2 = vadd.f32 %v298_v38, %v294_v49 }
  0x4f   :  { %v307_v6 = vadd.f32 %v303_v35, %v299_v44  ;;  %429 = vst [vmem:[%s1407_s7 + $0x58] sm:$0xff] %v276_v34  ;;  %v306_v7 = vmul.f32 %v276_v34, %v276_v34  ;;  %v308_v8 = vadd.f32 %v304_v33, %v300_v43 }
  0x50   :  { %v309_v14 = vadd.f32 %v305_v32, %v301_v1 }
  0x51   :  { %v310_v31 = vadd.f32 %v306_v7, %v302_v2  ;;  %636 = vrsqrt.f32 %v307_v6  ;;  %vm313_vm4 = vcmp.eq.f32.partialorder %v307_v6, inf  ;;  %vm315_vm5 = vcmp.eq.f32.partialorder %v307_v6, 0.0 }
  0x52   :  { %638 = vrsqrt.f32 %v308_v8  ;;  %v316_v16 = vand.u32 2147483648, %v307_v6  ;;  %vm320_vm6 = vcmp.eq.f32.partialorder %v308_v8, inf  ;;  %vm322_vm7 = vcmp.eq.f32.partialorder %v308_v8, 0.0 }
  0x53   :  { %640 = vrsqrt.f32 %v309_v14  ;;  %v323_v19 = vand.u32 2147483648, %v308_v8  ;;  %vm327_vm8 = vcmp.eq.f32.partialorder %v309_v14, inf  ;;  %vm329_vm9 = vcmp.eq.f32.partialorder %v309_v14, 0.0 }
  0x54   :  { %642 = vrsqrt.f32 %v310_v31  ;;  %v330_v22 = vand.u32 2147483648, %v309_v14  ;;  %vm334_vm10 = vcmp.eq.f32.partialorder %v310_v31, inf  ;;  %v337_v30 = vand.u32 2147483648, %v310_v31 }
  0x55   :  { %vm336_vm11 = vcmp.eq.f32.partialorder %v310_v31, 0.0 }
  0x5e   :  { %v637_v15 = vpop.eup %636 }
  0x5f   :  { %v639_v17 = vpop.eup %638  ;;  %v312_v18 = vmul.f32 %v637_v15, %v307_v6 }
  0x60   :  { %v641_v20 = vpop.eup %640  ;;  %v319_v21 = vmul.f32 %v639_v17, %v308_v8 }
  0x61   :  { %v643_v27 = vpop.eup %642  ;;  %v314_v28 = vsel %vm313_vm4, %v307_v6, %v312_v18  ;;  %v326_v29 = vmul.f32 %v641_v20, %v309_v14 }
  0x62   :  { %v317_v3 = vsel %vm315_vm5, %v316_v16, %v314_v28  ;;  %v321_v4 = vsel %vm320_vm6, %v308_v8, %v319_v21  ;;  %v333_v5 = vmul.f32 %v643_v27, %v310_v31 }
  0x63   :  { %430 = vst [vmem:[%s1407_s7 + $0x60] sm:$0xff] %v317_v3  ;;  %v324_v9 = vsel %vm322_vm7, %v323_v19, %v321_v4  ;;  %v328_v10 = vsel %vm327_vm8, %v309_v14, %v326_v29 }
  0x64   :  { %431 = vst [vmem:[%s1407_s7 + $0x68] sm:$0xff] %v324_v9  ;;  %v331_v11 = vsel %vm329_vm9, %v330_v22, %v328_v10  ;;  %v335_v13 = vsel %vm334_vm10, %v310_v31, %v333_v5 }
  0x65   :  { %432 = vst [vmem:[%s1407_s7 + $0x70] sm:$0xff] %v331_v11  ;;  %v338_v24 = vsel %vm336_vm11, %v337_v30, %v335_v13 }
  0x66   :  { %433 = vst [vmem:[%s1407_s7 + $0x78] sm:$0xff] %v338_v24 }
  0x67   :  { %349 = vsyncpa [#allocation5], 1 }

</bundles_post_ra>
